<compile_context>
chip_gen: v7x
topology: tpu7x:2x2x1
jax: 0.10.0
libtpu: 0.0.40
codegen_flags: <defaults>
</compile_context>

<pallas_src>
import functools

import jax
import jax.numpy as jnp
from jax.experimental import pallas as pl
from jax.experimental.pallas import tpu as pltpu


# ----------------------------- Pallas kernels ------------------------------

def _gemm_bias_act_kernel(w_ref, x_ref, b_ref, o_ref, *, apply_relu):
    """o = act(w @ x + b); w:(OC,K) x:(K,TS) b:(OC,1) o:(OC,TS). Lane-dense TS."""
    acc = jnp.dot(w_ref[...], x_ref[...], preferred_element_type=jnp.float32)
    acc = acc + b_ref[...]                     # (OC,1) broadcasts along lanes
    if apply_relu:
        acc = jnp.maximum(acc, 0.0)
    o_ref[...] = acc.astype(o_ref.dtype)


def _fc_chain_kernel(*refs, n_layers):
    """Fused MLP: refs = (x, w0, b0, w1, b1, ..., out). ReLU on all but last."""
    x_ref, o_ref = refs[0], refs[-1]
    h = x_ref[...]
    for i in range(n_layers):
        w = refs[1 + 2 * i][...]
        b = refs[2 + 2 * i][...]
        h = jnp.dot(h, w, preferred_element_type=jnp.float32) + b
        if i + 1 < n_layers:
            h = jnp.maximum(h, 0.0)
    o_ref[...] = h.astype(o_ref.dtype)


# ------------------------------ layer wrappers ------------------------------

def conv2d_bias_relu_t(xt, w, b, *, tile_s=256):
    """Valid conv, stride 1, fused bias+ReLU, lane-dense transposed GEMM.

    xt: (C, N, H, W) channel-major activations; w: (OC, C, KH, KW); b: (OC,).
    Returns (OC, N, OH, OW) -- already the next layer's input layout.
    """
    C, N, H, W = xt.shape
    OC, _, KH, KW = w.shape
    OH, OW = H - KH + 1, W - KW + 1
    S = N * OH * OW
    K = KH * KW * C

    # Window slabs: rows ordered (kh, kw, c); columns = (n, oh, ow) lane-dense.
    cols = jnp.concatenate(
        [xt[:, :, kh:kh + OH, kw:kw + OW].reshape(C, S)
         for kh in range(KH) for kw in range(KW)], axis=0)          # (K, S)
    wt = jnp.transpose(w, (0, 2, 3, 1)).reshape(OC, K)              # (OC, K)

    ts = S if S <= tile_s else tile_s          # 128-multiple or full-dim block
    grid = (pl.cdiv(S, ts),)
    kernel = functools.partial(_gemm_bias_act_kernel, apply_relu=True)
    y_t = pl.pallas_call(
        kernel,
        out_shape=jax.ShapeDtypeStruct((OC, S), xt.dtype),
        grid=grid,
        in_specs=[pl.BlockSpec((OC, K), lambda s: (0, 0)),
                  pl.BlockSpec((K, ts), lambda s: (0, s)),
                  pl.BlockSpec((OC, 1), lambda s: (0, 0))],
        out_specs=pl.BlockSpec((OC, ts), lambda s: (0, s)),
        compiler_params=pltpu.CompilerParams(
            dimension_semantics=("parallel",)),     # shards across v7x cores
    )(wt, cols, b.reshape(OC, 1))
    return y_t.reshape(OC, N, OH, OW)


def maxpool2d_t(xt, k):
    """nn.MaxPool2d(k, k, padding=shape[-1] % k) on (C, N, H, W) layout.

    Plain XLA pad/reshape/max (perf review: the Pallas pooling kernel and its
    window-stacking glue were pure overhead at these sizes).  Matches PyTorch:
    the single padding int is computed from the LAST dim (as the reference
    module does) and applied to both H and W; -inf padding; floor mode.
    """
    C, N, H, W = xt.shape
    p = W % k
    if p > k // 2:
        # PyTorch nn.MaxPool2d would reject this configuration.
        raise ValueError("maxpool padding > kernel_size // 2")
    if p:
        xt = jnp.pad(xt, ((0, 0), (0, 0), (p, p), (p, p)),
                     constant_values=-jnp.inf)
    Hp, Wp = H + 2 * p, W + 2 * p
    OH, OW = (Hp - k) // k + 1, (Wp - k) // k + 1
    xt = xt[:, :, :OH * k, :OW * k]
    return jnp.max(xt.reshape(C, N, OH, k, OW, k), axis=(3, 5))


def fc_chain(x, layers):
    """Fused MLP: single pallas_call over all (w, b) pairs; ReLU on all but last."""
    B, _ = x.shape
    n_layers = len(layers)
    n_out = layers[-1][0].shape[1]
    args = [x]
    in_specs = [pl.BlockSpec(x.shape, lambda i: (0, 0))]
    for (w, b) in layers:
        dk, dn = w.shape
        args.append(w)
        in_specs.append(pl.BlockSpec((dk, dn), lambda i: (0, 0)))
        args.append(b.reshape(1, dn))
        in_specs.append(pl.BlockSpec((1, dn), lambda i: (0, 0)))
    kernel = functools.partial(_fc_chain_kernel, n_layers=n_layers)
    return pl.pallas_call(
        kernel,
        out_shape=jax.ShapeDtypeStruct((B, n_out), x.dtype),
        grid=(1,),
        in_specs=in_specs,
        out_specs=pl.BlockSpec((B, n_out), lambda i: (0, 0)),
        compiler_params=pltpu.CompilerParams(
            dimension_semantics=("arbitrary",)),
    )(*args)


# -------------------------- parameters & forward ----------------------------

def init_params(key, n_conv, conv_ch, filter_size, fc_size, input_channels,
                input_size, pooling_size, n_classes):
    params = {"conv": [], "fc": []}
    fc_in = input_size
    in_ch = input_channels
    for i in range(n_conv):
        key, k1, k2 = jax.random.split(key, 3)
        fan_in = in_ch * filter_size[i] * filter_size[i]
        bound = 1.0 / float(fan_in) ** 0.5
        w = jax.random.uniform(
            k1, (conv_ch[i], in_ch, filter_size[i], filter_size[i]),
            jnp.float32, -bound, bound)
        b = jax.random.uniform(k2, (conv_ch[i],), jnp.float32, -bound, bound)
        params["conv"].append((w, b))
        in_ch = conv_ch[i]
        fc_in = fc_in - filter_size[i] + 1
        if pooling_size > 1:
            fc_in = (fc_in // pooling_size if fc_in % pooling_size == 0
                     else fc_in // pooling_size + 1)
    fc_in = conv_ch[-1] * fc_in * fc_in
    dims = [fc_in] + list(fc_size)
    for i in range(len(dims) - 1):
        key, k1, k2 = jax.random.split(key, 3)
        bound = 1.0 / float(dims[i]) ** 0.5
        w = jax.random.uniform(k1, (dims[i], dims[i + 1]), jnp.float32,
                               -bound, bound)
        b = jax.random.uniform(k2, (dims[i + 1],), jnp.float32, -bound, bound)
        params["fc"].append((w, b))
    key, k1, k2 = jax.random.split(key, 3)
    bound = 1.0 / float(fc_size[-1]) ** 0.5
    wo = jax.random.uniform(k1, (fc_size[-1], n_classes), jnp.float32,
                            -bound, bound)
    bo = jax.random.uniform(k2, (n_classes,), jnp.float32, -bound, bound)
    params["out"] = (wo, bo)
    return params


def convnet_forward(params, x, *, pooling_size):
    has_pooling = pooling_size > 1
    xt = x.transpose(1, 0, 2, 3)                   # NCHW -> (C, N, H, W), once
    for (w, b) in params["conv"]:
        xt = conv2d_bias_relu_t(xt, w, b)          # fused conv + bias + ReLU
        if has_pooling:
            xt = maxpool2d_t(xt, pooling_size)
    # torch.flatten(x, 1) on NCHW == transpose back then flatten per sample.
    n = xt.shape[1]
    x_flat = xt.transpose(1, 0, 2, 3).reshape(n, -1)
    layers = list(params["fc"]) + [params["out"]]  # ReLU on fc layers only
    return fc_chain(x_flat, layers)


# ----------------------------- pure-JAX reference ----------------------------

def _reference_forward(params, x, *, pooling_size):
    for (w, b) in params["conv"]:
        x = jax.lax.conv_general_dilated(
            x, w, (1, 1), "VALID",
            dimension_numbers=("NCHW", "OIHW", "NCHW"))
        x = jnp.maximum(x + b[None, :, None, None], 0.0)
        if pooling_size > 1:
            k = pooling_size
            p = x.shape[-1] % k
            if p:
                x = jnp.pad(x, ((0, 0), (0, 0), (p, p), (p, p)),
                            constant_values=-jnp.inf)
            nb, nc, hp, wp = x.shape
            oh, ow = (hp - k) // k + 1, (wp - k) // k + 1
            x = x[:, :, :oh * k, :ow * k].reshape(nb, nc, oh, k, ow, k)
            x = jnp.max(x, axis=(3, 5))
    x = x.reshape(x.shape[0], -1)
    for (w, b) in params["fc"]:
        x = jnp.maximum(x @ w + b, 0.0)
    wo, bo = params["out"]
    return x @ wo + bo


# ---------------------------------- main -------------------------------------

if __name__ == "__main__":
    # ConvNet(n_conv=2, n_fc=2, conv_ch=[4,8], filter_size=[3,3], fc_size=[32],
    #         pooling_size=2, input_size=16, input_channels=4, n_classes=10,
    #         activation_fn=relu)
    n_conv, n_fc = 2, 2
    conv_ch = [4, 8]
    filter_size = [3, 3]
    fc_size = [32]
    pooling_size = 2
    input_size = 16
    input_channels = 4
    n_classes = 10
    batch = 2

    key = jax.random.PRNGKey(0)
    kx, kp = jax.random.split(key)
    x = jax.random.normal(
        kx, (batch, input_channels, input_size, input_size), jnp.float32)
    params = init_params(kp, n_conv, conv_ch, filter_size, fc_size,
                         input_channels, input_size, pooling_size, n_classes)

    fwd = jax.jit(functools.partial(convnet_forward,
                                    pooling_size=pooling_size))
    out = jax.block_until_ready(fwd(params, x))
    assert out.shape == (batch, n_classes) and out.dtype == jnp.float32

    ref = jax.block_until_ready(
        _reference_forward(params, x, pooling_size=pooling_size))
    max_err = float(jnp.max(jnp.abs(out - ref)))
    assert max_err < 1e-3, f"mismatch vs reference: {max_err}"

    print("KERNEL_OK")
</pallas_src>

<mosaic_0001>
module attributes {stable_mosaic.version = 11 : i64} {
  func.func @_gemm_bias_act_kernel(%arg0: i32, %arg1: memref<4x36xf32, #tpu.memory_space<vmem>>, %arg2: memref<36x256xf32, #tpu.memory_space<vmem>>, %arg3: memref<4x1xf32, #tpu.memory_space<vmem>>, %arg4: memref<4x256xf32, #tpu.memory_space<vmem>>) attributes {dimension_semantics = [#tpu.dimension_semantics<parallel>], iteration_bounds = array<i64: 2>, scalar_prefetch = 0 : i64, scratch_operands = 0 : i64, tpu.core_type = #tpu.core_type<tc>, window_params = [{pipeline_mode = #tpu.pipeline_mode<synchronous>, transform_indices = @transform_0, window_bounds = array<i64: 4, 36>}, {transform_indices = @transform_1, window_bounds = array<i64: 36, 256>}, {pipeline_mode = #tpu.pipeline_mode<synchronous>, transform_indices = @transform_2, window_bounds = array<i64: 4, 1>}, {transform_indices = @transform_3, window_bounds = array<i64: 4, 256>}]} {
    %c0 = arith.constant 0 : index
    %c0_0 = arith.constant 0 : index
    %0 = vector.load %arg1[%c0, %c0_0] : memref<4x36xf32, #tpu.memory_space<vmem>>, vector<4x36xf32>
    %c0_1 = arith.constant 0 : index
    %c0_2 = arith.constant 0 : index
    %1 = vector.load %arg2[%c0_1, %c0_2] : memref<36x256xf32, #tpu.memory_space<vmem>>, vector<36x256xf32>
    %cst = arith.constant dense<0.000000e+00> : vector<4x256xf32>
    %2 = tpu.matmul %0, %1, %cst {dimension_numbers = #tpu.dot_dimension_numbers<[1], [0], [0], [1], [0, 0, 1, 1], [], []>} : vector<4x36xf32>, vector<36x256xf32>, vector<4x256xf32> -> vector<4x256xf32>
    %c0_3 = arith.constant 0 : index
    %c0_4 = arith.constant 0 : index
    %3 = vector.load %arg3[%c0_3, %c0_4] : memref<4x1xf32, #tpu.memory_space<vmem>>, vector<4x1xf32>
    %4 = vector.broadcast %3 : vector<4x1xf32> to vector<4x256xf32>
    %5 = arith.addf %2, %4 : vector<4x256xf32>
    %cst_5 = arith.constant 0.000000e+00 : f32
    %6 = vector.broadcast %cst_5 : f32 to vector<4x256xf32>
    %7 = arith.maximumf %5, %6 : vector<4x256xf32>
    %c0_6 = arith.constant 0 : index
    %c0_7 = arith.constant 0 : index
    %8 = vector.load %arg4[%c0_6, %c0_7] : memref<4x256xf32, #tpu.memory_space<vmem>>, vector<4x256xf32>
    tpu.vector_store %arg4[%c0_6, %c0_7], %7 {strides = array<i32>} : memref<4x256xf32, #tpu.memory_space<vmem>>, vector<4x256xf32>,
    return
  }
  func.func @transform_0(%arg0: i32) -> (i32, i32) {
    %c0_i32 = arith.constant 0 : i32
    %c0_i32_0 = arith.constant 0 : i32
    %c0_i32_1 = arith.constant 0 : i32
    return %c0_i32, %c0_i32_0 : i32, i32
  }
  func.func @transform_1(%arg0: i32) -> (i32, i32) {
    %c0_i32 = arith.constant 0 : i32
    %c0_i32_0 = arith.constant 0 : i32
    return %c0_i32, %arg0 : i32, i32
  }
  func.func @transform_2(%arg0: i32) -> (i32, i32) {
    %c0_i32 = arith.constant 0 : i32
    %c0_i32_0 = arith.constant 0 : i32
    %c0_i32_1 = arith.constant 0 : i32
    return %c0_i32, %c0_i32_0 : i32, i32
  }
  func.func @transform_3(%arg0: i32) -> (i32, i32) {
    %c0_i32 = arith.constant 0 : i32
    %c0_i32_0 = arith.constant 0 : i32
    return %c0_i32, %arg0 : i32, i32
  }
}

module attributes {stable_mosaic.version = 11 : i64} {
  func.func @_gemm_bias_act_kernel(%arg0: i32, %arg1: memref<8x36xf32, #tpu.memory_space<vmem>>, %arg2: memref<36x50xf32, #tpu.memory_space<vmem>>, %arg3: memref<8x1xf32, #tpu.memory_space<vmem>>, %arg4: memref<8x50xf32, #tpu.memory_space<vmem>>) attributes {dimension_semantics = [#tpu.dimension_semantics<parallel>], iteration_bounds = array<i64: 1>, scalar_prefetch = 0 : i64, scratch_operands = 0 : i64, tpu.core_type = #tpu.core_type<tc>, window_params = [{pipeline_mode = #tpu.pipeline_mode<synchronous>, transform_indices = @transform_0, window_bounds = array<i64: 8, 36>}, {transform_indices = @transform_1, window_bounds = array<i64: 36, 50>}, {pipeline_mode = #tpu.pipeline_mode<synchronous>, transform_indices = @transform_2, window_bounds = array<i64: 8, 1>}, {transform_indices = @transform_3, window_bounds = array<i64: 8, 50>}]} {
    %c0 = arith.constant 0 : index
    %c0_0 = arith.constant 0 : index
    %0 = vector.load %arg1[%c0, %c0_0] : memref<8x36xf32, #tpu.memory_space<vmem>>, vector<8x36xf32>
    %c0_1 = arith.constant 0 : index
    %c0_2 = arith.constant 0 : index
    %1 = vector.load %arg2[%c0_1, %c0_2] : memref<36x50xf32, #tpu.memory_space<vmem>>, vector<36x50xf32>
    %cst = arith.constant dense<0.000000e+00> : vector<8x50xf32>
    %2 = tpu.matmul %0, %1, %cst {dimension_numbers = #tpu.dot_dimension_numbers<[1], [0], [0], [1], [0, 0, 1, 1], [], []>} : vector<8x36xf32>, vector<36x50xf32>, vector<8x50xf32> -> vector<8x50xf32>
    %c0_3 = arith.constant 0 : index
    %c0_4 = arith.constant 0 : index
    %3 = vector.load %arg3[%c0_3, %c0_4] : memref<8x1xf32, #tpu.memory_space<vmem>>, vector<8x1xf32>
    %4 = vector.broadcast %3 : vector<8x1xf32> to vector<8x50xf32>
    %5 = arith.addf %2, %4 : vector<8x50xf32>
    %cst_5 = arith.constant 0.000000e+00 : f32
    %6 = vector.broadcast %cst_5 : f32 to vector<8x50xf32>
    %7 = arith.maximumf %5, %6 : vector<8x50xf32>
    %c0_6 = arith.constant 0 : index
    %c0_7 = arith.constant 0 : index
    %8 = vector.load %arg4[%c0_6, %c0_7] : memref<8x50xf32, #tpu.memory_space<vmem>>, vector<8x50xf32>
    tpu.vector_store %arg4[%c0_6, %c0_7], %7 {strides = array<i32>} : memref<8x50xf32, #tpu.memory_space<vmem>>, vector<8x50xf32>,
    return
  }
  func.func @transform_0(%arg0: i32) -> (i32, i32) {
    %c0_i32 = arith.constant 0 : i32
    %c0_i32_0 = arith.constant 0 : i32
    %c0_i32_1 = arith.constant 0 : i32
    return %c0_i32, %c0_i32_0 : i32, i32
  }
  func.func @transform_1(%arg0: i32) -> (i32, i32) {
    %c0_i32 = arith.constant 0 : i32
    %c0_i32_0 = arith.constant 0 : i32
    return %c0_i32, %arg0 : i32, i32
  }
  func.func @transform_2(%arg0: i32) -> (i32, i32) {
    %c0_i32 = arith.constant 0 : i32
    %c0_i32_0 = arith.constant 0 : i32
    %c0_i32_1 = arith.constant 0 : i32
    return %c0_i32, %c0_i32_0 : i32, i32
  }
  func.func @transform_3(%arg0: i32) -> (i32, i32) {
    %c0_i32 = arith.constant 0 : i32
    %c0_i32_0 = arith.constant 0 : i32
    return %c0_i32, %arg0 : i32, i32
  }
}

module attributes {stable_mosaic.version = 11 : i64} {
  func.func @_fc_chain_kernel(%arg0: i32, %arg1: memref<2x72xf32, #tpu.memory_space<vmem>>, %arg2: memref<72x32xf32, #tpu.memory_space<vmem>>, %arg3: memref<1x32xf32, #tpu.memory_space<vmem>>, %arg4: memref<32x10xf32, #tpu.memory_space<vmem>>, %arg5: memref<1x10xf32, #tpu.memory_space<vmem>>, %arg6: memref<2x10xf32, #tpu.memory_space<vmem>>) attributes {dimension_semantics = [#tpu.dimension_semantics<arbitrary>], iteration_bounds = array<i64: 1>, scalar_prefetch = 0 : i64, scratch_operands = 0 : i64, tpu.core_type = #tpu.core_type<tc>, window_params = [{pipeline_mode = #tpu.pipeline_mode<synchronous>, transform_indices = @transform_0, window_bounds = array<i64: 2, 72>}, {pipeline_mode = #tpu.pipeline_mode<synchronous>, transform_indices = @transform_1, window_bounds = array<i64: 72, 32>}, {pipeline_mode = #tpu.pipeline_mode<synchronous>, transform_indices = @transform_2, window_bounds = array<i64: 1, 32>}, {pipeline_mode = #tpu.pipeline_mode<synchronous>, transform_indices = @transform_3, window_bounds = array<i64: 32, 10>}, {pipeline_mode = #tpu.pipeline_mode<synchronous>, transform_indices = @transform_4, window_bounds = array<i64: 1, 10>}, {pipeline_mode = #tpu.pipeline_mode<synchronous>, transform_indices = @transform_5, window_bounds = array<i64: 2, 10>}]} {
    %c0 = arith.constant 0 : index
    %c0_0 = arith.constant 0 : index
    %0 = vector.load %arg1[%c0, %c0_0] : memref<2x72xf32, #tpu.memory_space<vmem>>, vector<2x72xf32>
    %c0_1 = arith.constant 0 : index
    %c0_2 = arith.constant 0 : index
    %1 = vector.load %arg2[%c0_1, %c0_2] : memref<72x32xf32, #tpu.memory_space<vmem>>, vector<72x32xf32>
    %c0_3 = arith.constant 0 : index
    %c0_4 = arith.constant 0 : index
    %2 = vector.load %arg3[%c0_3, %c0_4] : memref<1x32xf32, #tpu.memory_space<vmem>>, vector<1x32xf32>
    %cst = arith.constant dense<0.000000e+00> : vector<2x32xf32>
    %3 = tpu.matmul %0, %1, %cst {dimension_numbers = #tpu.dot_dimension_numbers<[1], [0], [0], [1], [0, 0, 1, 1], [], []>} : vector<2x72xf32>, vector<72x32xf32>, vector<2x32xf32> -> vector<2x32xf32>
    %4 = vector.broadcast %2 : vector<1x32xf32> to vector<2x32xf32>
    %5 = arith.addf %3, %4 : vector<2x32xf32>
    %cst_5 = arith.constant 0.000000e+00 : f32
    %6 = vector.broadcast %cst_5 : f32 to vector<2x32xf32>
    %7 = arith.maximumf %5, %6 : vector<2x32xf32>
    %c0_6 = arith.constant 0 : index
    %c0_7 = arith.constant 0 : index
    %8 = vector.load %arg4[%c0_6, %c0_7] : memref<32x10xf32, #tpu.memory_space<vmem>>, vector<32x10xf32>
    %c0_8 = arith.constant 0 : index
    %c0_9 = arith.constant 0 : index
    %9 = vector.load %arg5[%c0_8, %c0_9] : memref<1x10xf32, #tpu.memory_space<vmem>>, vector<1x10xf32>
    %cst_10 = arith.constant dense<0.000000e+00> : vector<2x10xf32>
    %10 = tpu.matmul %7, %8, %cst_10 {dimension_numbers = #tpu.dot_dimension_numbers<[1], [0], [0], [1], [0, 0, 1, 1], [], []>} : vector<2x32xf32>, vector<32x10xf32>, vector<2x10xf32> -> vector<2x10xf32>
    %11 = vector.broadcast %9 : vector<1x10xf32> to vector<2x10xf32>
    %12 = arith.addf %10, %11 : vector<2x10xf32>
    %c0_11 = arith.constant 0 : index
    %c0_12 = arith.constant 0 : index
    %13 = vector.load %arg6[%c0_11, %c0_12] : memref<2x10xf32, #tpu.memory_space<vmem>>, vector<2x10xf32>
    tpu.vector_store %arg6[%c0_11, %c0_12], %12 {strides = array<i32>} : memref<2x10xf32, #tpu.memory_space<vmem>>, vector<2x10xf32>,
    return
  }
  func.func @transform_0(%arg0: i32) -> (i32, i32) {
    %c0_i32 = arith.constant 0 : i32
    %c0_i32_0 = arith.constant 0 : i32
    %c0_i32_1 = arith.constant 0 : i32
    return %c0_i32, %c0_i32_0 : i32, i32
  }
  func.func @transform_1(%arg0: i32) -> (i32, i32) {
    %c0_i32 = arith.constant 0 : i32
    %c0_i32_0 = arith.constant 0 : i32
    %c0_i32_1 = arith.constant 0 : i32
    return %c0_i32, %c0_i32_0 : i32, i32
  }
  func.func @transform_2(%arg0: i32) -> (i32, i32) {
    %c0_i32 = arith.constant 0 : i32
    %c0_i32_0 = arith.constant 0 : i32
    %c0_i32_1 = arith.constant 0 : i32
    return %c0_i32, %c0_i32_0 : i32, i32
  }
  func.func @transform_3(%arg0: i32) -> (i32, i32) {
    %c0_i32 = arith.constant 0 : i32
    %c0_i32_0 = arith.constant 0 : i32
    %c0_i32_1 = arith.constant 0 : i32
    return %c0_i32, %c0_i32_0 : i32, i32
  }
  func.func @transform_4(%arg0: i32) -> (i32, i32) {
    %c0_i32 = arith.constant 0 : i32
    %c0_i32_0 = arith.constant 0 : i32
    %c0_i32_1 = arith.constant 0 : i32
    return %c0_i32, %c0_i32_0 : i32, i32
  }
  func.func @transform_5(%arg0: i32) -> (i32, i32) {
    %c0_i32 = arith.constant 0 : i32
    %c0_i32_0 = arith.constant 0 : i32
    %c0_i32_1 = arith.constant 0 : i32
    return %c0_i32, %c0_i32_0 : i32, i32
  }
}

</mosaic_0001>

<bundles_post_ra>
// kernel: convnet_forward.3
= control target key start
LH: loop header
LB: loop body
LE: loop exit
PB: predicated region body
PF: predicated region fallthrough
CT: control target
= control target key end

     0   :  { %s477_s12 = smov 0   ;;  %s479_s13 = smov 0   ;;  %s535_s0 = inlined_call_operand.vmem [shape: f32[4,36], index: 0, kind: input, shape index: {}]   ;;  %s536_s1 = inlined_call_operand.vmem [shape: f32[36,392], index: 1, kind: input, shape index: {}]   ;;  %s537_s2 = inlined_call_operand.vmem [shape: f32[4,1], index: 2, kind: input, shape index: {}]   ;;  %s538_s3 = inlined_call_operand.vmem [shape: f32[4,392], index: 3, kind: output, shape index: {}]  }
   0x1   :  { %s481_s14 = smov 0  }
   0x2 LB: > { %s379_s15 = sadd.s32 4294967295, %s453_s14   ;;  %s494_s16 = sadd.s32 1, %s453_s14   ;;  %s453_s14 = sphi %s481_s14, %s541_s14   ;;  %s449_s13 = sphi %s479_s13, %s540_s13   ;;  %s445_s12 = sphi %s477_s12, %s539_s12  }
   0x3   : > { %s38_s17 = ssub.s32 %s453_s14, %s494_s16  ;;  %s41_s18 = sadd.s32 1, %s449_s13 }
   0x4   : > { %p39_p0 = scmp.eq.s32.totalorder %s38_s17, 0  ;;  %p48_p1 = scmp.ne.s32.totalorder %s449_s13, %s445_s12 }
   0x5   : > { %p49_p2 = scmp.eq.s32.totalorder %s453_s14, 0  ;;  %p382_p4 = scmp.ge.s32.totalorder %s453_s14, 2 }
   0x6   : > { %s503_s19 = scalar_select %p39_p0, %s449_s13, %s41_s18  }
   0x7   : > { %p50_p3 = por %p49_p2, %p48_p1  ;;  %127 = sbr.rel (%p382_p4) target bundleno = 23 (0x17), region = 24 }
   0xe   : > { %130 = sbr.rel (!%p50_p3) target bundleno = 23 (0x17), region = 28  ;;  %s132_s20 = sand.u32 (%p50_p3), 1, %s449_s13  }
   0xf   : > { %s393_s21 = sshll.u32 (%p50_p3), %s453_s14, 4  ;;  %s402_s22 = smul.u32 (%p50_p3), 80, %s132_s20 }
  0x10   : > { %s137_s25 = scalar_lea.vmem (%p50_p3), %s536_s1, %s393_s21 }
  0x11   : > { %v150_v0 = vld [vmem:[%s137_s25] sm:$0xff] (%p50_p3)  ;;  %v152_v1 = vld [vmem:[%s137_s25 + $0x8] sm:$0xff] (%p50_p3)  ;;  %s134_s26 = scalar_lea.vmem (%p50_p3), [#allocation2], %s402_s22 }
  0x12   : > { %v154_v2 = vld [vmem:[%s137_s25 + $0x20] sm:$0xff] (%p50_p3)  ;;  %v156_v3 = vld [vmem:[%s137_s25 + $0x28] sm:$0xff] (%p50_p3)  ;;  %151 = vst [vmem:[%s134_s26] sm:$0xff] (%p50_p3), %v150_v0  ;;  %153 = vst [vmem:[%s134_s26 + $0x8] sm:$0xff] (%p50_p3), %v152_v1 }
  0x13   : > { %v158_v4 = vld [vmem:[%s137_s25 + $0x40] sm:$0xff] (%p50_p3)  ;;  %v160_v5 = vld [vmem:[%s137_s25 + $0x48] sm:$0xff] (%p50_p3)  ;;  %155 = vst [vmem:[%s134_s26 + $0x10] sm:$0xff] (%p50_p3), %v154_v2  ;;  %157 = vst [vmem:[%s134_s26 + $0x18] sm:$0xff] (%p50_p3), %v156_v3 }
  0x14   : > { %159 = vst [vmem:[%s134_s26 + $0x20] sm:$0xff] (%p50_p3), %v158_v4  ;;  %161 = vst [vmem:[%s134_s26 + $0x28] sm:$0xff] (%p50_p3), %v160_v5  ;;  %v162_v6 = vld [vmem:[%s137_s25 + $0x60] sm:$0xff] (%p50_p3)  ;;  %v164_v7 = vld [vmem:[%s137_s25 + $0x68] sm:$0xff] (%p50_p3) }
  0x15   : > { %v166_v8 = vld [vmem:[%s137_s25 + $0x80] sm:$0xff]  ;;  %163 = vst [vmem:[%s134_s26 + $0x30] sm:$0xff] %v162_v6  ;;  %165 = vst [vmem:[%s134_s26 + $0x38] sm:$0xff] %v164_v7  ;;  %v168_v9 = vld [vmem:[%s137_s25 + $0x88] sm:$0xff] }
  0x16   : > { %167 = vst [vmem:[%s134_s26 + $0x40] sm:$0xff] %v166_v8  ;;  %169 = vst [vmem:[%s134_s26 + $0x48] sm:$0xff] %v168_v9 }
  0x17 PF: > { %p385_p5 = scmp.ge.s32.totalorder %s453_s14, 1  ;;  %p174_p6 = scmp.lt.s32.totalorder %s453_s14, 3 }
  0x19   : > { %p175_p7 = pnand %p385_p5, %p174_p6 }
  0x1a   : > { %s181_s27 = sand.u32 (!%p175_p7), 1, %s445_s12   ;;  %v455_v10 = vmov (!%p175_p7), 0.0   ;;  %v222_v11 = vld [vmem:[%s537_s2] sm:$0xf] (!%p175_p7)  ;;  %v456_v12 = vmov (!%p175_p7), 0   ;;  %vm232_vm0 = vcmask (!%p175_p7), 1043456  }
  0x1b   : > { %178 = sbr.rel (%p175_p7) target bundleno = 264 (0x108), region = 51  ;;  %303 = vmatprep.mubr.f32.mxu0 (!%p175_p7), %v455_v10  ;;  %430 = vset.pattern.permute.xlu0 (!%p175_p7), %v456_v12  ;;  %v211_v27 = vld [vmem:[%s535_s0] sm:$0xf] (!%p175_p7)  ;;  %vm228_vm1 = vcmask (!%p175_p7), 293888   ;;  %s386_s7 = sshll.u32 (!%p175_p7), %s379_s15, 1 }
  0x1c   : > { %s403_s28 = smul.u32 (!%p175_p7), 80, %s181_s27  ;;  %225 = vperm.xlu0 (!%p175_p7), %430, %v222_v11   ;;  %p206_p8 = scmp.lt.s32.totalorder (!%p175_p7), %s386_s7, 3 }
  0x1e   : > { %s183_s4 = scalar_lea.vmem (!%p175_p7), [#allocation2], %s403_s28 }
  0x1f   : > { %v213_v13 = vld [vmem:[%s183_s4 + $0x8] sm:$0xff] (!%p175_p7)  ;;  %v215_v14 = vld [vmem:[%s183_s4 + $0x18] sm:$0xff] (!%p175_p7)  ;;  %v212_v15 = vld [vmem:[%s183_s4] sm:$0xff] (!%p175_p7) }
  0x20   : > { %v394_v16 = vpack.c.bf16 (!%p175_p7), %v215_v14, %v213_v13  ;;  %v214_v17 = vld [vmem:[%s183_s4 + $0x10] sm:$0xff] (!%p175_p7)  ;;  %v217_v18 = vld [vmem:[%s183_s4 + $0x28] sm:$0xff] (!%p175_p7)  ;;  %v219_v19 = vld [vmem:[%s183_s4 + $0x38] sm:$0xff] (!%p175_p7) }
  0x21   : > { %v396_v20 = vpack.c.bf16 (!%p175_p7), %v214_v17, %v212_v15  ;;  %v398_v21 = vpack.c.bf16 (!%p175_p7), %v219_v19, %v217_v18  ;;  %v216_v22 = vld [vmem:[%s183_s4 + $0x20] sm:$0xff] (!%p175_p7)  ;;  %v218_v23 = vld [vmem:[%s183_s4 + $0x30] sm:$0xff] (!%p175_p7)  ;;  %v221_v25 = vld [vmem:[%s183_s4 + $0x48] sm:$0xf] (!%p175_p7) }
  0x22   : > { %395 = vmatprep.subr.bf16.mxu0 %v394_v16  ;;  %v400_v24 = vpack.c.bf16 %v218_v23, %v216_v22  ;;  %v220_v26 = vld [vmem:[%s183_s4 + $0x40] sm:$0xf]  ;;  %s543_s7 = smov (!%p206_p8, %s386_s7), 3 }
  0x23   : > { %397 = vmatpush1.bf16.msra.mxu0 %v396_v20  ;;  %s387_s8 = sshll.u32 %s543_s7, 2 }
  0x24   : > { %399 = vmatprep.subr.bf16.mxu0 %v398_v21  ;;  %s209_s11 = scalar_lea.vmem %s538_s3, %s387_s8 }
  0x27   : > { %401 = vmatpush1.bf16.msra.mxu0 %v400_v24 }
  0x28   : > { %388 = vmatprep.subr.msk.mxu0 %vm232_vm0, %v221_v25 }
  0x2b   : > { %389 = vmatpush1.msk.msra.mxu0 %vm232_vm0, %v220_v26 }
  0x2c   : > { %390 = vmatmul.mubr.msk.f32.vlgmr.msra.gmra.mrb[0].mxu0 %vm228_vm1, %v211_v27 }
  0x9b   : > { %v226_v28 = vpop.permute.xlu0 %225 }
  0xff   : > { %v305_v29 = vpop.f32.mrb[0].mxu0 }
 0x100   : > { %v306_v30 = vadd.f32 %v305_v29, %v226_v28  ;;  %v307_v31 = vpop.f32.mrb[1].mxu0 }
 0x101   : > { %v308_v32 = vadd.f32 %v307_v31, %v226_v28 }
 0x102   : > { %v310_v33 = vmax.f32 %v306_v30, 0.0 }
 0x103   : > { %v311_v34 = vmax.f32 %v308_v32, 0.0 }
 0x105   : > { %v314_v35 = vcombine.low %v310_v33, %v311_v34 }
 0x107   : > { %316 = vst [vmem:[%s209_s11] sm:$0xff] %v314_v35 }
 0x108 PF: > { %p10_p9 = scmp.ge.s32.totalorder %s494_s16, 4   ;;  %s539_s12 = smov %s449_s13 }
 0x109   : > { %s540_s13 = smov %s503_s19  ;;  %s541_s14 = smov %s494_s16 }
 0x10a   :  { %12 = sbr.rel (!%p10_p9) target bundleno = 2 (0x2), region = 90 }

// kernel: convnet_forward.4
= control target key start
LH: loop header
LB: loop body
LE: loop exit
PB: predicated region body
PF: predicated region fallthrough
CT: control target
= control target key end

     0   :  { %v143_v0 = vmov 0.0|0.0   ;;  %vm144_vm0 = vmmov 0   ;;  %v145_v4 = vmov 0.0   ;;  %v146_v7 = vmov 0   ;;  %s191_s1 = inlined_call_operand.vmem [shape: f32[36,50], index: 1, kind: input, shape index: {}]   ;;  %s192_s2 = inlined_call_operand.vmem [shape: f32[8,1], index: 2, kind: input, shape index: {}]   ;;  %s193_s0 = inlined_call_operand.vmem [shape: f32[8,36], index: 0, kind: input, shape index: {}]   ;;  %s194_s3 = inlined_call_operand.vmem [shape: f32[8,50], index: 3, kind: output, shape index: {}]  }
   0x1   :  { %132 = vmatprep.subr.bf16.mxu0 %v143_v0  ;;  %v15_v1 = vld [vmem:[%s191_s1] sm:$0xff]  ;;  %v16_v2 = vld [vmem:[%s191_s1 + $0x8] sm:$0xff]  ;;  %v17_v3 = vld [vmem:[%s191_s1 + $0x10] sm:$0xff]  ;;  %129 = vmatprep.mubr.msk.f32.mxu0 %vm144_vm0, %v145_v4  ;;  %vm30_vm1 = vcmask 1043456   ;;  %vm26_vm2 = vcmask 293888   ;;  %vm105_vm3 = vcmask 408576  }
   0x2   :  { %v133_v5 = vpack.c.bf16 %v16_v2, %v15_v1  ;;  %v18_v6 = vld [vmem:[%s191_s1 + $0x18] sm:$0xff]  ;;  %142 = vset.pattern.permute.xlu0 %v146_v7  ;;  %v20_v8 = vld [vmem:[%s192_s2] sm:$0xff] }
   0x3   :  { %v136_v9 = vpack.c.bf16 %v18_v6, %v17_v3  ;;  %23 = vperm.xlu0 %142, %v20_v8   ;;  %v19_v10 = vld [vmem:[%s191_s1 + $0x20] sm:$0xf] }
   0x4   :  { %134 = vmatpush3.bf16.msra.mxu0 %v133_v5  ;;  %v14_v11 = vld [vmem:[%s193_s0] sm:$0xff] }
   0x5   :  { %135 = vmatprep.subr.bf16.mxu0 %v143_v0 }
   0x8   :  { %137 = vmatpush3.bf16.msra.mxu0 %v136_v9 }
   0x9   :  { %127 = vmatprep.subr.mxu0 %v145_v4 }
   0xc   :  { %128 = vmatpush3.msk.msra.mxu0 %vm30_vm1, %v19_v10 }
   0xd   :  { %130 = vmatmul.mubr.msk.f32.vlgmr.msra.gmra.mrb[0].mxu0 %vm26_vm2, %v14_v11 }
  0x82   :  { %v24_v12 = vpop.permute.xlu0 %23 }
  0xe0   :  { %v100_v13 = vpop.f32.mrb[0].mxu0 }
  0xe1   :  { %v101_v14 = vadd.f32 %v100_v13, %v24_v12  ;;  %v131_v15 = vpop.f32.mrb[1].mxu0 }
  0xe3   :  { %v104_v16 = vmax.f32 %v101_v14, 0.0 }
  0xe5   :  { %106 = vst.msk [vmem:[%s194_s3] sm:$0xff] %vm105_vm3, %v104_v16 }

// kernel: convnet_forward.5
= control target key start
LH: loop header
LB: loop body
LE: loop exit
PB: predicated region body
PF: predicated region fallthrough
CT: control target
= control target key end

     0   :  { %v311_v3 = vmov 0.0|0.0   ;;  %vm312_vm0 = vmmov 0   ;;  %v313_v6 = vmov 0.0   ;;  %s405_s0 = inlined_call_operand.vmem [shape: f32[2,72], index: 0, kind: input, shape index: {}]   ;;  %s406_s1 = inlined_call_operand.vmem [shape: f32[72,32], index: 1, kind: input, shape index: {}]   ;;  %s407_s2 = inlined_call_operand.vmem [shape: f32[1,32], index: 2, kind: input, shape index: {}]   ;;  %s408_s3 = inlined_call_operand.vmem [shape: f32[32,10], index: 3, kind: input, shape index: {}]   ;;  %s409_s4 = inlined_call_operand.vmem [shape: f32[1,10], index: 4, kind: input, shape index: {}]   ;;  %s410_s5 = inlined_call_operand.hbm [shape: f32[2,10], index: 5, kind: output, shape index: {}]  }
   0x1   :  { %v22_v0 = vld [vmem:[%s406_s1] sm:$0xff]  ;;  %v23_v1 = vld [vmem:[%s406_s1 + $0x8] sm:$0xff]  ;;  %v24_v2 = vld [vmem:[%s406_s1 + $0x10] sm:$0xff]  ;;  %265 = vmatprep.subr.bf16.mxu0 %v311_v3  ;;  %251 = vmatprep.mubr.msk.f32.mxu0 %vm312_vm0, %v313_v6 }
   0x2   :  { %v266_v4 = vpack.c.bf16 %v23_v1, %v22_v0  ;;  %v25_v5 = vld [vmem:[%s406_s1 + $0x18] sm:$0xff]  ;;  %277 = vmatprep.subr.bf16.mxu1 %v311_v3  ;;  %262 = vmatprep.mubr.msk.f32.mxu1 %vm312_vm0, %v313_v6  ;;  %v113_v8 = vld [vmem:[%s408_s3] sm:$0xff]  ;;  %v114_v9 = vld [vmem:[%s408_s3 + $0x8] sm:$0xff] }
   0x3   :  { %v269_v7 = vpack.c.bf16 %v25_v5, %v24_v2  ;;  %v26_v10 = vld [vmem:[%s406_s1 + $0x20] sm:$0xff]  ;;  %v27_v11 = vld [vmem:[%s406_s1 + $0x28] sm:$0xff]  ;;  %v278_v12 = vpack.c.bf16 %v114_v9, %v113_v8 }
   0x4   :  { %267 = vmatpush3.bf16.msra.mxu0 %v266_v4 }
   0x5   :  { %268 = vmatprep.subr.bf16.mxu0 %v311_v3 }
   0x6   :  { %10 = vsyncpa [#allocation3], 0  ;;  %279 = vmatpush3.bf16.msra.mxu1 %v278_v12  ;;  %v272_v13 = vpack.c.bf16 %v27_v11, %v26_v10  ;;  %v28_v14 = vld [vmem:[%s406_s1 + $0x30] sm:$0xff]  ;;  %v29_v15 = vld [vmem:[%s406_s1 + $0x38] sm:$0xff]  ;;  %vm38_vm1 = vcmask 588800   ;;  %vm124_vm2 = vcmask 261120  }
   0x7   :  { %280 = vmatprep.subr.bf16.mxu1 %v311_v3  ;;  %v275_v16 = vpack.c.bf16 %v29_v15, %v28_v14  ;;  %v30_v17 = vld [vmem:[%s406_s1 + $0x40] sm:$0xff]  ;;  %v115_v19 = vld [vmem:[%s408_s3 + $0x10] sm:$0xff]  ;;  %v116_v20 = vld [vmem:[%s408_s3 + $0x18] sm:$0xff]  ;;  %s314_s23 = smov [#allocation2]   ;;  %vm198_vm3 = vcmask 74752  }
   0x8   :  { %270 = vmatpush3.bf16.msra.mxu0 %v269_v7  ;;  %v21_v18 = vld [vmem:[%s405_s0] sm:$0x3]  ;;  %v281_v21 = vpack.c.bf16 %v116_v20, %v115_v19  ;;  %s206_s24 = sshll.u32 %s314_s23, 4  ;;  %s207_s24 = int_to_ptr.vmem [resolvable:$true] %s206_s24 }
   0x9   :  { %271 = vmatprep.subr.bf16.mxu0 %v311_v3  ;;  %v214_v22 = vld [vmem:[%s407_s2] ss:$0 sm:$0xff]  ;;  %s287_s3 = scalar_lea.vmem %s207_s24, 32  ;;  %p292_p1 = scmp.lt.s32.totalorder %s207_s24, %s207_s24 }
   0xa   :  { %282 = vmatpush3.bf16.msra.mxu1 %v281_v21  ;;  %v216_v27 = vld [vmem:[%s409_s4] ss:$0 sm:$0xff]  ;;  %p288_p0 = scmp.ne.s32.totalorder %s207_s24, %s287_s3  ;;  %p293_p2 = scmp.lt.s32.totalorder %s287_s3, %s287_s3 }
   0xc   :  { %273 = vmatpush3.bf16.msra.mxu0 %v272_v13  ;;  %p294_p3 = por %p293_p2, %p292_p1 }
   0xd   :  { %274 = vmatprep.subr.bf16.mxu0 %v311_v3 }
   0xe   :  { %p295_p4 = pnand %p294_p3, %p288_p0 }
  0x10   :  { %276 = vmatpush3.bf16.msra.mxu0 %v275_v16 }
  0x11   :  { %249 = vmatprep.subr.mxu0 %v313_v6 }
  0x14   :  { %250 = vmatpush3.msra.mxu0 %v30_v17 }
  0x15   :  { %252 = vmatmul.mubr.msk.f32.vlgmr.msra.gmra.mrb[0].mxu0 %vm38_vm1, %v21_v18 }
  0xe8   :  { %v108_v23 = vpop.f32.mrb[0].mxu0 }
  0xe9   :  { %v109_v24 = vadd.f32 %v214_v22, %v108_v23  ;;  %v253_v25 = vpop.f32.mrb[1].mxu0 }
  0xeb   :  { %v112_v26 = vmax.f32 %v109_v24, 0.0 }
  0xed   :  { %263 = vmatmul.mubr.msk.f32.vlgmr.msra.gmra.mrb[0].mxu1 %vm124_vm2, %v112_v26 }
 0x1c0   :  { %v194_v28 = vpop.f32.mrb[0].mxu1 }
 0x1c1   :  { %v195_v29 = vadd.f32 %v216_v27, %v194_v28  ;;  %v264_v30 = vpop.f32.mrb[1].mxu1 }
 0x1c3   :  { %199 = vst.msk [vmem:[#allocation2] sm:$0x3] %vm198_vm3, %v195_v29 }
 0x1c4   :  { %298 = shalt.err (!%p295_p4)
}
 0x1c5   :  { %s299_s26 = scalar_lea.hbm %s410_s5, 32 }
 0x1c6   :  { %p300_p5 = scmp.ne.s32.totalorder %s410_s5, %s299_s26  ;;  %p303_p6 = scmp.lt.u32.totalorder %s299_s26, %s410_s5 }
 0x1c8   :  { %p305_p7 = pnand %p303_p6, %p300_p5 }
 0x1ca   :  { %308 = shalt.err (!%p305_p7)
}
 0x1cb   :  { %209 = dma.vmem_to_hbm [thread:$0]  %s207_s24, 32, %s410_s5, [#allocation3]  }
 0x1cc   :  { %309 = dma.done.wait [#allocation3], 32  }
 0x1cd   :  { %310 = vsyncadd [#allocation3], 4294967264 }
 0x1ce   :  { %213 = vsyncpa [#allocation3], 1 }

</bundles_post_ra>
